<compile_context>
chip_gen: v7x
topology: tpu7x:2x2x1
jax: 0.10.0
libtpu: 0.0.40
codegen_flags: <defaults>
</compile_context>

<pallas_src>
import jax
import jax.numpy as jnp
from jax.experimental import pallas as pl
from jax.experimental.pallas import tpu as pltpu

IN_FEATURES = 3072
OUT_FEATURES = 10
TB_MAX = 512  # default batch tile; v5e/v6e (128 MiB VMEM) may pass tb_max=1024


def _round_up(n, m):
    return ((n + m - 1) // m) * m


def linear_kernel(x_ref, w_ref, b_ref, o_ref):
    # x_ref: (TB, 3072) f32  -> cast to bf16 (cheap VPU work, hides under DMA)
    # w_ref: (3072, 10) bf16 (resident across the whole grid)
    # b_ref: (1, 10)    f32  (resident)
    # o_ref: (TB, 10)   f32
    acc = jnp.dot(
        x_ref[...].astype(jnp.bfloat16),   # native bf16 x bf16 MXU path
        w_ref[...],
        preferred_element_type=jnp.float32,
    )
    o_ref[...] = (acc + b_ref[...]).astype(o_ref.dtype)


def prepare_params(weight, bias, weight_dtype=jnp.bfloat16):
    """One-time parameter prep (hoisted out of the per-call forward path).

    weight: (10, 3072) f32 (PyTorch nn.Linear layout)
    bias:   (10,)      f32
    returns w_t: (3072, 10) weight_dtype, b_row: (1, 10) f32
    """
    w_t = jnp.asarray(weight).T.astype(weight_dtype)             # (3072, 10)
    b_row = jnp.asarray(bias, jnp.float32).reshape(1, OUT_FEATURES)
    return w_t, b_row


def _batch_tile(batch, tb_max):
    # >= 2 tiles once the batch is big enough (v7x megacore sharding + x DMA
    # double-buffering), >= 8 rows (sublane granule), <= tb_max.
    half = _round_up(pl.cdiv(batch, 2), 8)
    return max(8, min(tb_max, half))


def linear_pallas(x_flat, w_t, b_row, *, tb_max=TB_MAX):
    """x_flat: (B, 3072) f32, w_t: (3072, 10) bf16, b_row: (1, 10) f32 -> (B, 10) f32."""
    B = x_flat.shape[0]
    tb = _batch_tile(B, tb_max)
    num_tiles = pl.cdiv(B, tb)

    # No jnp.pad of x: the (possibly partial) last block is masked by Pallas,
    # so there is no extra HBM read+write of the dominant byte stream and no
    # trailing slice on the output.
    vmem_limit = (48 if tb > 512 else 32) * 1024 * 1024

    return pl.pallas_call(
        linear_kernel,
        out_shape=jax.ShapeDtypeStruct((B, OUT_FEATURES), jnp.float32),
        grid_spec=pltpu.PrefetchScalarGridSpec(
            num_scalar_prefetch=0,
            grid=(num_tiles,),
            in_specs=[
                pl.BlockSpec((tb, IN_FEATURES), lambda i: (i, 0)),            # x: batch-tiled
                pl.BlockSpec((IN_FEATURES, OUT_FEATURES), lambda i: (0, 0)),  # weight: resident
                pl.BlockSpec((1, OUT_FEATURES), lambda i: (0, 0)),            # bias: resident
            ],
            out_specs=pl.BlockSpec((tb, OUT_FEATURES), lambda i: (i, 0)),
        ),
        compiler_params=pltpu.CompilerParams(
            dimension_semantics=("parallel",),   # batch tiles are independent
            vmem_limit_bytes=vmem_limit,
        ),
    )(x_flat, w_t, b_row)


def my_model_forward(x, w_t, b_row, *, tb_max=TB_MAX, small_batch_fallback=False):
    """Equivalent of My_model.forward.

    x: (B, 3, 32, 32) or (B, 3072) float32
    w_t, b_row: from prepare_params()
    returns (B, 10) float32
    """
    B = x.shape[0]
    x_flat = x.reshape(B, IN_FEATURES)
    if small_batch_fallback and B <= 64:
        # Tiny batches are launch-overhead dominated; XLA's fused GEMV matches
        # the kernel there.  Off by default so the demo exercises Pallas.
        return (
            jnp.dot(x_flat.astype(jnp.bfloat16), w_t, preferred_element_type=jnp.float32)
            + b_row
        )
    return linear_pallas(x_flat, w_t, b_row, tb_max=tb_max)


if __name__ == "__main__":
    key = jax.random.PRNGKey(0)
    k_x, k_w, k_b, k_x2 = jax.random.split(key, 4)

    # Small, module-consistent shapes: CIFAR-10 style image batch -> 3072 features.
    B = 2
    x = jax.random.normal(k_x, (B, 3, 32, 32), dtype=jnp.float32)

    # Deterministic nn.Linear-style init: U(-1/sqrt(fan_in), 1/sqrt(fan_in)).
    bound = 1.0 / (IN_FEATURES ** 0.5)
    weight = jax.random.uniform(
        k_w, (OUT_FEATURES, IN_FEATURES), jnp.float32, minval=-bound, maxval=bound
    )
    bias = jax.random.uniform(
        k_b, (OUT_FEATURES,), jnp.float32, minval=-bound, maxval=bound
    )

    # One-time parameter prep (not part of the per-call forward path).
    w_t, b_row = prepare_params(weight, bias)

    fwd = jax.jit(my_model_forward, static_argnames=("tb_max", "small_batch_fallback"))
    y = fwd(x, w_t, b_row)
    jax.block_until_ready(y)
    assert y.shape == (B, OUT_FEATURES), y.shape

    # Exact-ish check against a reference using the same bf16 inputs / f32 accumulate.
    x_flat = x.reshape(B, IN_FEATURES)
    y_q = (
        jnp.dot(x_flat.astype(jnp.bfloat16), w_t, preferred_element_type=jnp.float32)
        + b_row
    )
    assert jnp.allclose(y, y_q, atol=1e-3, rtol=1e-3), float(jnp.max(jnp.abs(y - y_q)))

    # Semantic check against the full-f32 nn.Linear reference
    # (difference is bf16 weight/activation quantization noise).
    y_ref = x_flat @ weight.T + bias
    assert jnp.allclose(y, y_ref, atol=2e-2, rtol=2e-2), float(jnp.max(jnp.abs(y - y_ref)))

    # Second call exercising multiple grid tiles and a partial last tile
    # (B not a multiple of 8) — validates the no-pad / masked-block path.
    B2 = 19
    x2 = jax.random.normal(k_x2, (B2, IN_FEATURES), dtype=jnp.float32)
    y2 = fwd(x2, w_t, b_row)
    jax.block_until_ready(y2)
    assert y2.shape == (B2, OUT_FEATURES), y2.shape
    y2_ref = x2 @ weight.T + bias
    assert jnp.allclose(y2, y2_ref, atol=2e-2, rtol=2e-2), float(
        jnp.max(jnp.abs(y2 - y2_ref))
    )

    print("KERNEL_OK")
</pallas_src>

<mosaic_0001>
module attributes {stable_mosaic.version = 11 : i64} {
  func.func @linear_kernel(%arg0: i32, %arg1: memref<8x3072xf32, #tpu.memory_space<vmem>>, %arg2: memref<3072x10xbf16, #tpu.memory_space<vmem>>, %arg3: memref<1x10xf32, #tpu.memory_space<vmem>>, %arg4: memref<8x10xf32, #tpu.memory_space<vmem>>) attributes {dimension_semantics = [#tpu.dimension_semantics<parallel>], iteration_bounds = array<i64: 1>, scalar_prefetch = 0 : i64, scratch_operands = 0 : i64, tpu.core_type = #tpu.core_type<tc>, window_params = [{transform_indices = @transform_0, window_bounds = array<i64: 8, 3072>}, {pipeline_mode = #tpu.pipeline_mode<synchronous>, transform_indices = @transform_1, window_bounds = array<i64: 3072, 10>}, {pipeline_mode = #tpu.pipeline_mode<synchronous>, transform_indices = @transform_2, window_bounds = array<i64: 1, 10>}, {transform_indices = @transform_3, window_bounds = array<i64: 8, 10>}]} {
    %c0 = arith.constant 0 : index
    %c0_0 = arith.constant 0 : index
    %0 = vector.load %arg1[%c0, %c0_0] : memref<8x3072xf32, #tpu.memory_space<vmem>>, vector<8x3072xf32>
    %1 = arith.truncf %0 : vector<8x3072xf32> to vector<8x3072xbf16>
    %c0_1 = arith.constant 0 : index
    %c0_2 = arith.constant 0 : index
    %2 = vector.load %arg2[%c0_1, %c0_2] : memref<3072x10xbf16, #tpu.memory_space<vmem>>, vector<3072x10xbf16>
    %cst = arith.constant dense<0.000000e+00> : vector<8x10xf32>
    %3 = tpu.matmul %1, %2, %cst {dimension_numbers = #tpu.dot_dimension_numbers<[1], [0], [0], [1], [0, 0, 1, 1], [], []>} : vector<8x3072xbf16>, vector<3072x10xbf16>, vector<8x10xf32> -> vector<8x10xf32>
    %c0_3 = arith.constant 0 : index
    %c0_4 = arith.constant 0 : index
    %4 = vector.load %arg3[%c0_3, %c0_4] : memref<1x10xf32, #tpu.memory_space<vmem>>, vector<1x10xf32>
    %5 = vector.broadcast %4 : vector<1x10xf32> to vector<8x10xf32>
    %6 = arith.addf %3, %5 : vector<8x10xf32>
    %c0_5 = arith.constant 0 : index
    %c0_6 = arith.constant 0 : index
    %7 = vector.load %arg4[%c0_5, %c0_6] : memref<8x10xf32, #tpu.memory_space<vmem>>, vector<8x10xf32>
    tpu.vector_store %arg4[%c0_5, %c0_6], %6 {strides = array<i32>} : memref<8x10xf32, #tpu.memory_space<vmem>>, vector<8x10xf32>,
    return
  }
  func.func @transform_0(%arg0: i32) -> (i32, i32) {
    %c0_i32 = arith.constant 0 : i32
    %c0_i32_0 = arith.constant 0 : i32
    return %arg0, %c0_i32 : i32, i32
  }
  func.func @transform_1(%arg0: i32) -> (i32, i32) {
    %c0_i32 = arith.constant 0 : i32
    %c0_i32_0 = arith.constant 0 : i32
    %c0_i32_1 = arith.constant 0 : i32
    return %c0_i32, %c0_i32_0 : i32, i32
  }
  func.func @transform_2(%arg0: i32) -> (i32, i32) {
    %c0_i32 = arith.constant 0 : i32
    %c0_i32_0 = arith.constant 0 : i32
    %c0_i32_1 = arith.constant 0 : i32
    return %c0_i32, %c0_i32_0 : i32, i32
  }
  func.func @transform_3(%arg0: i32) -> (i32, i32) {
    %c0_i32 = arith.constant 0 : i32
    %c0_i32_0 = arith.constant 0 : i32
    return %arg0, %c0_i32 : i32, i32
  }
}

</mosaic_0001>

<bundles_post_ra>
// kernel: my_model_forward.1
= control target key start
LH: loop header
LB: loop body
LE: loop exit
PB: predicated region body
PF: predicated region fallthrough
CT: control target
= control target key end

     0   :  { %8 = vsyncpa [#allocation3], 0  ;;  %v71_v29 = vlaneseq  ;;  %v3082_v34 = vmov 1983009808   ;;  %vm2351_vm0 = vcmask 80896   ;;  %s3795_s0 = inlined_call_operand.vmem [shape: f32[2,3072], index: 0, kind: input, shape index: {}]   ;;  %s3796_s1 = inlined_call_operand.vmem [shape: bf16[3072,10], index: 1, kind: input, shape index: {}]   ;;  %s3797_s2 = inlined_call_operand.vmem [shape: f32[1,10], index: 2, kind: input, shape index: {}]   ;;  %s3798_s3 = inlined_call_operand.hbm [shape: f32[2,10], index: 3, kind: output, shape index: {}]  }
   0x1   :  { %v2830_v0 = vld [vmem:[%s3796_s1 + $0x40] sm:$0xff]   ;;  %v2834_v4 = vld [vmem:[%s3796_s1 + $0x48] sm:$0xff]   ;;  %v2838_v8 = vld [vmem:[%s3796_s1 + $0x50] sm:$0xff]   ;;  %v69_v35 = vunpack.c.l.s4 %v3082_v34 }
   0x2   :  { %v2831_v1 = vld [vmem:[%s3796_s1 + $0xc0] sm:$0xff]   ;;  %2562 = vmatprep.subr.bf16.mxu0 %v2830_v0  ;;  %v2835_v5 = vld [vmem:[%s3796_s1 + $0xc8] sm:$0xff]   ;;  %v2839_v9 = vld [vmem:[%s3796_s1 + $0xd0] sm:$0xff]   ;;  %v72_v36 = vshrl.u32 %v71_v29, 7 }
   0x3   :  { %v2832_v2 = vld [vmem:[%s3796_s1] sm:$0xff]   ;;  %2584 = vmatprep.subr.bf16.mxu1 %v2831_v1  ;;  %v2836_v6 = vld [vmem:[%s3796_s1 + $0x8] sm:$0xff]   ;;  %v2840_v10 = vld [vmem:[%s3796_s1 + $0x10] sm:$0xff]   ;;  %v70_v40 = vunpack.c.0.s8 %v69_v35 }
   0x4   :  { %v2833_v3 = vld [vmem:[%s3796_s1 + $0x80] sm:$0xff]   ;;  %2563 = vmatpush3.bf16.msra.mxu0 %v2832_v2  ;;  %v2837_v7 = vld [vmem:[%s3796_s1 + $0x88] sm:$0xff]   ;;  %v2841_v11 = vld [vmem:[%s3796_s1 + $0x90] sm:$0xff]  }
   0x5   :  { %2585 = vmatpush3.bf16.msra.mxu1 %v2833_v3  ;;  %2564 = vmatprep.subr.bf16.mxu0 %v2834_v4  ;;  %v2842_v12 = vld [vmem:[%s3796_s1 + $0x58] sm:$0xff]   ;;  %v2846_v16 = vld [vmem:[%s3796_s1 + $0x60] sm:$0xff]   ;;  %v2850_v20 = vld [vmem:[%s3796_s1 + $0x68] sm:$0xff]   ;;  %v3220_v43 = vsub.s32 %v70_v40, %v72_v36 }
   0x6   :  { %2586 = vmatprep.subr.bf16.mxu1 %v2835_v5  ;;  %v2843_v13 = vld [vmem:[%s3796_s1 + $0xd8] sm:$0xff]   ;;  %v2847_v17 = vld [vmem:[%s3796_s1 + $0xe0] sm:$0xff]   ;;  %v2851_v21 = vld [vmem:[%s3796_s1 + $0xe8] sm:$0xff]  }
   0x7   :  { %v2844_v14 = vld [vmem:[%s3796_s1 + $0x18] sm:$0xff]   ;;  %v2848_v18 = vld [vmem:[%s3796_s1 + $0x20] sm:$0xff]   ;;  %v2852_v22 = vld [vmem:[%s3796_s1 + $0x28] sm:$0xff]  }
   0x8   :  { %2565 = vmatpush3.bf16.msra.mxu0 %v2836_v6  ;;  %v2845_v15 = vld [vmem:[%s3796_s1 + $0x98] sm:$0xff]   ;;  %v2849_v19 = vld [vmem:[%s3796_s1 + $0xa0] sm:$0xff]   ;;  %v2853_v23 = vld [vmem:[%s3796_s1 + $0xa8] sm:$0xff]  }
   0x9   :  { %2587 = vmatpush3.bf16.msra.mxu1 %v2837_v7  ;;  %2566 = vmatprep.subr.bf16.mxu0 %v2838_v8  ;;  %v2854_v24 = vld [vmem:[%s3796_s1 + $0x70] sm:$0xff]   ;;  %v2858_v28 = vld [vmem:[%s3796_s1 + $0x78] sm:$0xff]   ;;  %v2868_v41 = vld [vmem:[%s3796_s1 + $0x140] sm:$0xff]  }
   0xa   :  { %2588 = vmatprep.subr.bf16.mxu1 %v2839_v9  ;;  %v2855_v25 = vld [vmem:[%s3796_s1 + $0xf0] sm:$0xff]   ;;  %v2859_v30 = vld [vmem:[%s3796_s1 + $0xf8] sm:$0xff]   ;;  %v2869_v42 = vld [vmem:[%s3796_s1 + $0x1c0] sm:$0xff]  }
   0xb   :  { %v2856_v26 = vld [vmem:[%s3796_s1 + $0x30] sm:$0xff]   ;;  %v2860_v31 = vld [vmem:[%s3796_s1 + $0x38] sm:$0xff]   ;;  %v2870_v52 = vld [vmem:[%s3796_s1 + $0x100] sm:$0xff]  }
   0xc   :  { %2567 = vmatpush3.bf16.msra.mxu0 %v2840_v10  ;;  %v2857_v27 = vld [vmem:[%s3796_s1 + $0xb0] sm:$0xff]   ;;  %v2861_v32 = vld [vmem:[%s3796_s1 + $0xb8] sm:$0xff]   ;;  %v2871_v53 = vld [vmem:[%s3796_s1 + $0x180] sm:$0xff]  }
   0xd   :  { %2589 = vmatpush3.bf16.msra.mxu1 %v2841_v11  ;;  %2568 = vmatprep.subr.bf16.mxu0 %v2842_v12  ;;  %v2862_v33 = vld [vmem:[%s3795_s0] ss:$48 sps:$4 sm:$0xff]   ;;  %v2866_v38 = vld [vmem:[%s3795_s0 + $0x4] ss:$48 sps:$4 sm:$0xff]   ;;  %v2872_v58 = vld [vmem:[%s3796_s1 + $0x148] sm:$0xff]  }
   0xe   :  { %2590 = vmatprep.subr.bf16.mxu1 %v2843_v13  ;;  %v2864_v37 = vld [vmem:[%s3795_s0 + $0x60] ss:$48 sps:$4 sm:$0xff]   ;;  %v2867_v39 = vld [vmem:[%s3795_s0 + $0x64] ss:$48 sps:$4 sm:$0xff]   ;;  %v74_v44 = vrot.slane %v2862_v33, %v3220_v43  ;;  %v81_v46 = vrot.slane %v2866_v38, %v3220_v43  ;;  %v2873_v59 = vld [vmem:[%s3796_s1 + $0x1c8] sm:$0xff]  }
   0xf   :  { %v88_v45 = vrot.slane %v2864_v37, %v3220_v43  ;;  %v95_v47 = vrot.slane %v2867_v39, %v3220_v43  ;;  %v2874_v60 = vld [vmem:[%s3796_s1 + $0x108] sm:$0xff]   ;;  %v2876_v62 = vld [vmem:[%s3796_s1 + $0x150] sm:$0xff]   ;;  %v2880_v2 = vld [vmem:[%s3796_s1 + $0x158] sm:$0xff]  }
  0x10   :  { %2569 = vmatpush3.bf16.msra.mxu0 %v2844_v14  ;;  %v2875_v61 = vld [vmem:[%s3796_s1 + $0x188] sm:$0xff]   ;;  %v2877_v63 = vld [vmem:[%s3796_s1 + $0x1d0] sm:$0xff]   ;;  %v2881_v3 = vld [vmem:[%s3796_s1 + $0x1d8] sm:$0xff]  }
  0x11   :  { %2591 = vmatpush3.bf16.msra.mxu1 %v2845_v15  ;;  %2570 = vmatprep.subr.bf16.mxu0 %v2846_v16  ;;  %v97_v48 = vcombine.high %v74_v44, %v88_v45  ;;  %v99_v49 = vcombine.high %v81_v46, %v95_v47  ;;  %v96_v50 = vcombine.low %v74_v44, %v88_v45  ;;  %v2878_v0 = vld [vmem:[%s3796_s1 + $0x110] sm:$0xff]   ;;  %v2882_v4 = vld [vmem:[%s3796_s1 + $0x118] sm:$0xff]   ;;  %v2884_v6 = vld [vmem:[%s3796_s1 + $0x160] sm:$0xff]  }
  0x12   :  { %2592 = vmatprep.subr.bf16.mxu1 %v2847_v17  ;;  %v98_v51 = vcombine.low %v81_v46, %v95_v47  ;;  %v2879_v1 = vld [vmem:[%s3796_s1 + $0x190] sm:$0xff]   ;;  %v2883_v5 = vld [vmem:[%s3796_s1 + $0x198] sm:$0xff]   ;;  %v2885_v7 = vld [vmem:[%s3796_s1 + $0x1e0] sm:$0xff]  }
  0x13   :  { %v305_v54 = vpack.c.bf16 %v97_v48, %v97_v48  ;;  %v307_v55 = vpack.c.bf16 %v99_v49, %v99_v49  ;;  %v304_v56 = vpack.c.bf16 %v96_v50, %v96_v50  ;;  %v2886_v8 = vld [vmem:[%s3796_s1 + $0x120] sm:$0xff]   ;;  %v2888_v10 = vld [vmem:[%s3796_s1 + $0x168] sm:$0xff]   ;;  %v2892_v14 = vld [vmem:[%s3796_s1 + $0x170] sm:$0xff]  }
  0x14   :  { %2571 = vmatpush3.bf16.msra.mxu0 %v2848_v18  ;;  %v306_v57 = vpack.c.bf16 %v98_v51, %v98_v51  ;;  %v2887_v9 = vld [vmem:[%s3796_s1 + $0x1a0] sm:$0xff]   ;;  %v2889_v11 = vld [vmem:[%s3796_s1 + $0x1e8] sm:$0xff]   ;;  %v2893_v15 = vld [vmem:[%s3796_s1 + $0x1f0] sm:$0xff]  }
  0x15   :  { %2593 = vmatpush3.bf16.msra.mxu1 %v2849_v19  ;;  %2572 = vmatprep.subr.bf16.mxu0 %v2850_v20  ;;  %v2890_v12 = vld [vmem:[%s3796_s1 + $0x128] sm:$0xff]   ;;  %v2894_v16 = vld [vmem:[%s3796_s1 + $0x130] sm:$0xff]   ;;  %v2896_v18 = vld [vmem:[%s3796_s1 + $0x178] sm:$0xff]  }
  0x16   :  { %2594 = vmatprep.subr.bf16.mxu1 %v2851_v21  ;;  %1903 = vmatprep.mubr.bf16.mxu0 %v305_v54  ;;  %v2891_v13 = vld [vmem:[%s3796_s1 + $0x1a8] sm:$0xff]   ;;  %v2895_v17 = vld [vmem:[%s3796_s1 + $0x1b0] sm:$0xff]   ;;  %v2897_v19 = vld [vmem:[%s3796_s1 + $0x1f8] sm:$0xff]  }
  0x17   :  { %1943 = vmatprep.mubr.bf16.mxu1 %v307_v55  ;;  %v2900_v20 = vld [vmem:[%s3795_s0 + $0x8] ss:$48 sps:$4 sm:$0xff]   ;;  %v2907_v33 = vld [vmem:[%s3796_s1 + $0x2c0] sm:$0xff]   ;;  %v2914_v47 = vld [vmem:[%s3796_s1 + $0x250] sm:$0xff]  }
  0x18   :  { %2573 = vmatpush3.bf16.msra.mxu0 %v2852_v22  ;;  %v2902_v21 = vld [vmem:[%s3795_s0 + $0x68] ss:$48 sps:$4 sm:$0xff]   ;;  %v2908_v36 = vld [vmem:[%s3796_s1 + $0x200] sm:$0xff]   ;;  %v2915_v48 = vld [vmem:[%s3796_s1 + $0x2d0] sm:$0xff]  }
  0x19   :  { %2595 = vmatpush3.bf16.msra.mxu1 %v2853_v23  ;;  %2574 = vmatprep.subr.bf16.mxu0 %v2854_v24  ;;  %v2898_v22 = vld [vmem:[%s3796_s1 + $0x138] sm:$0xff]   ;;  %v2909_v39 = vld [vmem:[%s3796_s1 + $0x280] sm:$0xff]   ;;  %v2911_v44 = vld [vmem:[%s3796_s1 + $0x2c8] sm:$0xff]  }
  0x1a   :  { %2596 = vmatprep.subr.bf16.mxu1 %v2855_v25  ;;  %v2904_v23 = vld [vmem:[%s3795_s0 + $0xc] ss:$48 sps:$4 sm:$0xff]   ;;  %v2916_v49 = vld [vmem:[%s3796_s1 + $0x210] sm:$0xff]   ;;  %v2922_v55 = vld [vmem:[%s3796_s1 + $0x260] sm:$0xff]  }
  0x1b   :  { %v2905_v24 = vld [vmem:[%s3795_s0 + $0x6c] ss:$48 sps:$4 sm:$0xff]   ;;  %v2917_v50 = vld [vmem:[%s3796_s1 + $0x290] sm:$0xff]  }
  0x1c   :  { %2575 = vmatpush3.bf16.msra.mxu0 %v2856_v26  ;;  %v2899_v25 = vld [vmem:[%s3796_s1 + $0x1b8] sm:$0xff]   ;;  %v110_v26 = vrot.slane %v2900_v20, %v3220_v43  ;;  %v131_v29 = vrot.slane %v2905_v24, %v3220_v43  ;;  %v2912_v45 = vld [vmem:[%s3796_s1 + $0x208] sm:$0xff]  }
  0x1d   :  { %2597 = vmatpush3.bf16.msra.mxu1 %v2857_v27  ;;  %2576 = vmatprep.subr.bf16.mxu0 %v2858_v28  ;;  %v124_v27 = vrot.slane %v2902_v21, %v3220_v43  ;;  %v117_v28 = vrot.slane %v2904_v23, %v3220_v43  ;;  %v2913_v46 = vld [vmem:[%s3796_s1 + $0x288] sm:$0xff]   ;;  %v2918_v51 = vld [vmem:[%s3796_s1 + $0x258] sm:$0xff]  }
  0x1e   :  { %2598 = vmatprep.subr.bf16.mxu1 %v2859_v30  ;;  %v2906_v30 = vld [vmem:[%s3796_s1 + $0x240] sm:$0xff]   ;;  %v2921_v54 = vld [vmem:[%s3796_s1 + $0x298] sm:$0xff]  }
  0x1f   :  { %v135_v34 = vcombine.high %v117_v28, %v131_v29  ;;  %v134_v35 = vcombine.low %v117_v28, %v131_v29  ;;  %v2949_v28 = vld [vmem:[%s3796_s1 + $0x3c8] sm:$0xff]  }
  0x20   :  { %2577 = vmatpush3.bf16.msra.mxu0 %v2860_v31  ;;  %v133_v31 = vcombine.high %v110_v26, %v124_v27  ;;  %v2950_v29 = vld [vmem:[%s3796_s1 + $0x308] sm:$0xff]  }
  0x21   :  { %2599 = vmatpush3.bf16.msra.mxu1 %v2861_v32  ;;  %2606 = vmatprep.subr.bf16.mxu0 %v2868_v41  ;;  %v132_v32 = vcombine.low %v110_v26, %v124_v27  ;;  %v311_v40 = vpack.c.bf16 %v135_v34, %v135_v34  ;;  %v310_v41 = vpack.c.bf16 %v134_v35, %v134_v35  ;;  %v2955_v34 = vld [vmem:[%s3796_s1 + $0x390] sm:$0xff]   ;;  %v2956_v35 = vld [vmem:[%s3796_s1 + $0x358] sm:$0xff]  }
  0x22   :  { %2628 = vmatprep.subr.bf16.mxu1 %v2869_v42  ;;  %v309_v37 = vpack.c.bf16 %v133_v31, %v133_v31  ;;  %v2910_v42 = vld [vmem:[%s3796_s1 + $0x248] sm:$0xff]   ;;  %v2952_v31 = vld [vmem:[%s3796_s1 + $0x350] sm:$0xff]  }
  0x23   :  { %1904 = vmatmul.mubr.bf16.vlgmr.msra.gmra.mrb[0].mxu0 %v304_v56  ;;  %v308_v38 = vpack.c.bf16 %v132_v32, %v132_v32  ;;  %v2923_v56 = vld [vmem:[%s3796_s1 + $0x2e0] sm:$0xff]   ;;  %v2953_v32 = vld [vmem:[%s3796_s1 + $0x3d0] sm:$0xff]  }
  0x24   :  { %1944 = vmatmul.mubr.bf16.vlgmr.msra.gmra.mrb[0].mxu1 %v306_v57  ;;  %2607 = vmatpush3.bf16.msra.mxu0 %v2870_v52  ;;  %v2919_v52 = vld [vmem:[%s3796_s1 + $0x2d8] sm:$0xff]   ;;  %v2924_v57 = vld [vmem:[%s3796_s1 + $0x220] sm:$0xff]  }
  0x25   :  { %2629 = vmatpush3.bf16.msra.mxu1 %v2871_v53  ;;  %2608 = vmatprep.subr.bf16.mxu0 %v2872_v58  ;;  %v2920_v53 = vld [vmem:[%s3796_s1 + $0x218] sm:$0xff]   ;;  %v2925_v58 = vld [vmem:[%s3796_s1 + $0x2a0] sm:$0xff]  }
  0x26   :  { %2630 = vmatprep.subr.bf16.mxu1 %v2873_v59  ;;  %1983 = vmatprep.mubr.bf16.mxu0 %v309_v37  ;;  %v2926_v59 = vld [vmem:[%s3796_s1 + $0x268] sm:$0xff]   ;;  %v2958_v37 = vld [vmem:[%s3796_s1 + $0x318] sm:$0xff]  }
  0x27   :  { %2023 = vmatprep.mubr.bf16.mxu1 %v311_v40  ;;  %v2961_v40 = vld [vmem:[%s3796_s1 + $0x3e0] sm:$0xff]  }
  0x28   :  { %2609 = vmatpush3.bf16.msra.mxu0 %v2874_v60  ;;  %v2927_v60 = vld [vmem:[%s3796_s1 + $0x2e8] sm:$0xff]  }
  0x29   :  { %2631 = vmatpush3.bf16.msra.mxu1 %v2875_v61  ;;  %2610 = vmatprep.subr.bf16.mxu0 %v2876_v62  ;;  %v2928_v61 = vld [vmem:[%s3796_s1 + $0x228] sm:$0xff]  }
  0x2a   :  { %2632 = vmatprep.subr.bf16.mxu1 %v2877_v63  ;;  %v2929_v62 = vld [vmem:[%s3796_s1 + $0x2a8] sm:$0xff]   ;;  %v2930_v63 = vld [vmem:[%s3796_s1 + $0x270] sm:$0xff]  }
  0x2c   :  { %2611 = vmatpush3.bf16.msra.mxu0 %v2878_v0  ;;  %v2931_v0 = vld [vmem:[%s3796_s1 + $0x2f0] sm:$0xff]  }
  0x2d   :  { %2633 = vmatpush3.bf16.msra.mxu1 %v2879_v1  ;;  %2612 = vmatprep.subr.bf16.mxu0 %v2880_v2  ;;  %v2932_v1 = vld [vmem:[%s3796_s1 + $0x230] sm:$0xff]  }
  0x2e   :  { %2634 = vmatprep.subr.bf16.mxu1 %v2881_v3  ;;  %v2933_v2 = vld [vmem:[%s3796_s1 + $0x2b0] sm:$0xff]   ;;  %v2934_v3 = vld [vmem:[%s3796_s1 + $0x278] sm:$0xff]  }
  0x30   :  { %2613 = vmatpush3.bf16.msra.mxu0 %v2882_v4  ;;  %v2935_v4 = vld [vmem:[%s3796_s1 + $0x2f8] sm:$0xff]  }
  0x31   :  { %2635 = vmatpush3.bf16.msra.mxu1 %v2883_v5  ;;  %2614 = vmatprep.subr.bf16.mxu0 %v2884_v6  ;;  %v2936_v5 = vld [vmem:[%s3796_s1 + $0x238] sm:$0xff]  }
  0x32   :  { %2636 = vmatprep.subr.bf16.mxu1 %v2885_v7  ;;  %v2937_v6 = vld [vmem:[%s3796_s1 + $0x2b8] sm:$0xff]   ;;  %v2938_v7 = vld [vmem:[%s3795_s0 + $0x10] ss:$48 sps:$4 sm:$0xff]  }
  0x34   :  { %2615 = vmatpush3.bf16.msra.mxu0 %v2886_v8  ;;  %v2940_v8 = vld [vmem:[%s3795_s0 + $0x70] ss:$48 sps:$4 sm:$0xff]  }
  0x35   :  { %2637 = vmatpush3.bf16.msra.mxu1 %v2887_v9  ;;  %2616 = vmatprep.subr.bf16.mxu0 %v2888_v10  ;;  %v2942_v9 = vld [vmem:[%s3795_s0 + $0x14] ss:$48 sps:$4 sm:$0xff]  }
  0x36   :  { %2638 = vmatprep.subr.bf16.mxu1 %v2889_v11  ;;  %v2943_v10 = vld [vmem:[%s3795_s0 + $0x74] ss:$48 sps:$4 sm:$0xff]   ;;  %v146_v11 = vrot.slane %v2938_v7, %v3220_v43 }
  0x37   :  { %v2985_v7 = vld [vmem:[%s3796_s1 + $0x480] sm:$0xff]  }
  0x38   :  { %2617 = vmatpush3.bf16.msra.mxu0 %v2890_v12  ;;  %v160_v12 = vrot.slane %v2940_v8, %v3220_v43 }
  0x39   :  { %2639 = vmatpush3.bf16.msra.mxu1 %v2891_v13  ;;  %2618 = vmatprep.subr.bf16.mxu0 %v2892_v14  ;;  %v153_v13 = vrot.slane %v2942_v9, %v3220_v43  ;;  %v2944_v14 = vld [vmem:[%s3796_s1 + $0x340] sm:$0xff]  }
  0x3a   :  { %2640 = vmatprep.subr.bf16.mxu1 %v2893_v15  ;;  %v167_v15 = vrot.slane %v2943_v10, %v3220_v43 }
  0x3c   :  { %2619 = vmatpush3.bf16.msra.mxu0 %v2894_v16  ;;  %v2945_v16 = vld [vmem:[%s3796_s1 + $0x3c0] sm:$0xff]   ;;  %v171_v20 = vcombine.high %v153_v13, %v167_v15  ;;  %v170_v21 = vcombine.low %v153_v13, %v167_v15  ;;  %v2987_v13 = vld [vmem:[%s3796_s1 + $0x4c8] sm:$0xff]  }
  0x3d   :  { %2641 = vmatpush3.bf16.msra.mxu1 %v2895_v17  ;;  %2620 = vmatprep.subr.bf16.mxu0 %v2896_v18  ;;  %v169_v17 = vcombine.high %v146_v11, %v160_v12  ;;  %v168_v18 = vcombine.low %v146_v11, %v160_v12  ;;  %v2986_v12 = vld [vmem:[%s3796_s1 + $0x448] sm:$0xff]  }
  0x3e   :  { %2642 = vmatprep.subr.bf16.mxu1 %v2897_v19  ;;  %v2946_v19 = vld [vmem:[%s3796_s1 + $0x300] sm:$0xff]   ;;  %v315_v26 = vpack.c.bf16 %v171_v20, %v171_v20  ;;  %v314_v27 = vpack.c.bf16 %v170_v21, %v170_v21  ;;  %v2989_v15 = vld [vmem:[%s3796_s1 + $0x488] sm:$0xff]   ;;  %v2994_v20 = vld [vmem:[%s3796_s1 + $0x458] sm:$0xff]  }
  0x3f   :  { %v313_v23 = vpack.c.bf16 %v169_v17, %v169_v17  ;;  %v312_v24 = vpack.c.bf16 %v168_v18, %v168_v18  ;;  %v2991_v17 = vld [vmem:[%s3796_s1 + $0x4d0] sm:$0xff]   ;;  %v2995_v21 = vld [vmem:[%s3796_s1 + $0x4d8] sm:$0xff]  }
  0x40   :  { %2621 = vmatpush3.bf16.msra.mxu0 %v2898_v22  ;;  %v2947_v22 = vld [vmem:[%s3796_s1 + $0x380] sm:$0xff]   ;;  %v2992_v18 = vld [vmem:[%s3796_s1 + $0x410] sm:$0xff]  }
  0x41   :  { %2643 = vmatpush3.bf16.msra.mxu1 %v2899_v25  ;;  %2650 = vmatprep.subr.bf16.mxu0 %v2906_v30  ;;  %v2948_v25 = vld [vmem:[%s3796_s1 + $0x348] sm:$0xff]  }
  0x42   :  { %2672 = vmatprep.subr.bf16.mxu1 %v2907_v33  ;;  %v2951_v30 = vld [vmem:[%s3796_s1 + $0x388] sm:$0xff]   ;;  %v2954_v33 = vld [vmem:[%s3796_s1 + $0x310] sm:$0xff]  }
  0x43   :  { %1984 = vmatmul.mubr.bf16.vlgmr.msra.gmra.mrb[4].mxu0 %v308_v38  ;;  %v2959_v38 = vld [vmem:[%s3796_s1 + $0x398] sm:$0xff]  }
  0x44   :  { %2024 = vmatmul.mubr.bf16.vlgmr.msra.gmra.mrb[4].mxu1 %v310_v41  ;;  %2651 = vmatpush3.bf16.msra.mxu0 %v2908_v36  ;;  %v2957_v36 = vld [vmem:[%s3796_s1 + $0x3d8] sm:$0xff]   ;;  %v2962_v41 = vld [vmem:[%s3796_s1 + $0x320] sm:$0xff]  }
  0x45   :  { %2673 = vmatpush3.bf16.msra.mxu1 %v2909_v39  ;;  %2652 = vmatprep.subr.bf16.mxu0 %v2910_v42  ;;  %v2960_v39 = vld [vmem:[%s3796_s1 + $0x360] sm:$0xff]  }
  0x46   :  { %2674 = vmatprep.subr.bf16.mxu1 %v2911_v44  ;;  %2063 = vmatprep.mubr.bf16.mxu0 %v313_v23  ;;  %v2963_v42 = vld [vmem:[%s3796_s1 + $0x3a0] sm:$0xff]   ;;  %v2964_v44 = vld [vmem:[%s3796_s1 + $0x368] sm:$0xff]   ;;  %v2997_v23 = vld [vmem:[%s3796_s1 + $0x498] sm:$0xff]  }
  0x47   :  { %2103 = vmatprep.mubr.bf16.mxu1 %v315_v26  ;;  %v3000_v26 = vld [vmem:[%s3796_s1 + $0x420] sm:$0xff]  }
  0x48   :  { %2653 = vmatpush3.bf16.msra.mxu0 %v2912_v45  ;;  %v2965_v45 = vld [vmem:[%s3796_s1 + $0x3e8] sm:$0xff]  }
  0x49   :  { %2675 = vmatpush3.bf16.msra.mxu1 %v2913_v46  ;;  %2654 = vmatprep.subr.bf16.mxu0 %v2914_v47  ;;  %v2966_v46 = vld [vmem:[%s3796_s1 + $0x328] sm:$0xff]  }
  0x4a   :  { %2676 = vmatprep.subr.bf16.mxu1 %v2915_v48  ;;  %v2967_v47 = vld [vmem:[%s3796_s1 + $0x3a8] sm:$0xff]   ;;  %v2968_v48 = vld [vmem:[%s3796_s1 + $0x370] sm:$0xff]  }
  0x4c   :  { %2655 = vmatpush3.bf16.msra.mxu0 %v2916_v49  ;;  %v2969_v49 = vld [vmem:[%s3796_s1 + $0x3f0] sm:$0xff]  }
  0x4d   :  { %2677 = vmatpush3.bf16.msra.mxu1 %v2917_v50  ;;  %2656 = vmatprep.subr.bf16.mxu0 %v2918_v51  ;;  %v2970_v50 = vld [vmem:[%s3796_s1 + $0x330] sm:$0xff]  }
  0x4e   :  { %2678 = vmatprep.subr.bf16.mxu1 %v2919_v52  ;;  %v2971_v51 = vld [vmem:[%s3796_s1 + $0x3b0] sm:$0xff]   ;;  %v2972_v52 = vld [vmem:[%s3796_s1 + $0x378] sm:$0xff]  }
  0x50   :  { %2657 = vmatpush3.bf16.msra.mxu0 %v2920_v53  ;;  %v2973_v53 = vld [vmem:[%s3796_s1 + $0x3f8] sm:$0xff]  }
  0x51   :  { %2679 = vmatpush3.bf16.msra.mxu1 %v2921_v54  ;;  %2658 = vmatprep.subr.bf16.mxu0 %v2922_v55  ;;  %v2974_v54 = vld [vmem:[%s3796_s1 + $0x338] sm:$0xff]  }
  0x52   :  { %2680 = vmatprep.subr.bf16.mxu1 %v2923_v56  ;;  %v2975_v55 = vld [vmem:[%s3796_s1 + $0x3b8] sm:$0xff]  }
  0x53   :  { %v2976_v56 = vld [vmem:[%s3795_s0 + $0x18] ss:$48 sps:$4 sm:$0xff]  }
  0x54   :  { %2659 = vmatpush3.bf16.msra.mxu0 %v2924_v57  ;;  %v2978_v57 = vld [vmem:[%s3795_s0 + $0x78] ss:$48 sps:$4 sm:$0xff]  }
  0x55   :  { %2681 = vmatpush3.bf16.msra.mxu1 %v2925_v58  ;;  %2660 = vmatprep.subr.bf16.mxu0 %v2926_v59  ;;  %v2980_v58 = vld [vmem:[%s3795_s0 + $0x1c] ss:$48 sps:$4 sm:$0xff]  }
  0x56   :  { %2682 = vmatprep.subr.bf16.mxu1 %v2927_v60  ;;  %v2981_v59 = vld [vmem:[%s3795_s0 + $0x7c] ss:$48 sps:$4 sm:$0xff]   ;;  %v182_v60 = vrot.slane %v2976_v56, %v3220_v43  ;;  %v3023_v56 = vld [vmem:[%s3796_s1 + $0x580] sm:$0xff]  }
  0x58   :  { %2661 = vmatpush3.bf16.msra.mxu0 %v2928_v61  ;;  %v2982_v61 = vld [vmem:[%s3796_s1 + $0x440] sm:$0xff]  }
  0x59   :  { %2683 = vmatpush3.bf16.msra.mxu1 %v2929_v62  ;;  %2662 = vmatprep.subr.bf16.mxu0 %v2930_v63  ;;  %v196_v62 = vrot.slane %v2978_v57, %v3220_v43  ;;  %v189_v63 = vrot.slane %v2980_v58, %v3220_v43 }
  0x5a   :  { %2684 = vmatprep.subr.bf16.mxu1 %v2931_v0  ;;  %v203_v0 = vrot.slane %v2981_v59, %v3220_v43  ;;  %v3024_v59 = vld [vmem:[%s3796_s1 + $0x548] sm:$0xff]  }
  0x5c   :  { %2663 = vmatpush3.bf16.msra.mxu0 %v2932_v1  ;;  %v2983_v1 = vld [vmem:[%s3796_s1 + $0x4c0] sm:$0xff]  }
  0x5d   :  { %2685 = vmatpush3.bf16.msra.mxu1 %v2933_v2  ;;  %2664 = vmatprep.subr.bf16.mxu0 %v2934_v3  ;;  %v205_v2 = vcombine.high %v182_v60, %v196_v62  ;;  %v207_v3 = vcombine.high %v189_v63, %v203_v0 }
  0x5e   :  { %2686 = vmatprep.subr.bf16.mxu1 %v2935_v4  ;;  %v204_v4 = vcombine.low %v182_v60, %v196_v62  ;;  %v3025_v62 = vld [vmem:[%s3796_s1 + $0x5c8] sm:$0xff]  }
  0x5f   :  { %v317_v8 = vpack.c.bf16 %v205_v2, %v205_v2  ;;  %v319_v9 = vpack.c.bf16 %v207_v3, %v207_v3  ;;  %v3029_v2 = vld [vmem:[%s3796_s1 + $0x5d0] sm:$0xff]  }
  0x60   :  { %2665 = vmatpush3.bf16.msra.mxu0 %v2936_v5  ;;  %v206_v5 = vcombine.low %v189_v63, %v203_v0  ;;  %v316_v10 = vpack.c.bf16 %v204_v4, %v204_v4  ;;  %v3026_v63 = vld [vmem:[%s3796_s1 + $0x508] sm:$0xff]   ;;  %v3030_v3 = vld [vmem:[%s3796_s1 + $0x510] sm:$0xff]  }
  0x61   :  { %2687 = vmatpush3.bf16.msra.mxu1 %v2937_v6  ;;  %2694 = vmatprep.subr.bf16.mxu0 %v2944_v14  ;;  %v2984_v6 = vld [vmem:[%s3796_s1 + $0x400] sm:$0xff]   ;;  %v2988_v14 = vld [vmem:[%s3796_s1 + $0x408] sm:$0xff]   ;;  %v3031_v4 = vld [vmem:[%s3796_s1 + $0x590] sm:$0xff]  }
  0x62   :  { %2716 = vmatprep.subr.bf16.mxu1 %v2945_v16  ;;  %v318_v11 = vpack.c.bf16 %v206_v5, %v206_v5  ;;  %v2990_v16 = vld [vmem:[%s3796_s1 + $0x450] sm:$0xff]   ;;  %v3027_v0 = vld [vmem:[%s3796_s1 + $0x588] sm:$0xff]   ;;  %v3032_v5 = vld [vmem:[%s3796_s1 + $0x558] sm:$0xff]  }
  0x63   :  { %2064 = vmatmul.mubr.bf16.vlgmr.msra.gmra.mrb[8].mxu0 %v312_v24  ;;  %v2998_v24 = vld [vmem:[%s3796_s1 + $0x460] sm:$0xff]  }
  0x64   :  { %2104 = vmatmul.mubr.bf16.vlgmr.msra.gmra.mrb[8].mxu1 %v314_v27  ;;  %2695 = vmatpush3.bf16.msra.mxu0 %v2946_v19  ;;  %v2993_v19 = vld [vmem:[%s3796_s1 + $0x490] sm:$0xff]   ;;  %v3001_v27 = vld [vmem:[%s3796_s1 + $0x4a0] sm:$0xff]  }
  0x65   :  { %2717 = vmatpush3.bf16.msra.mxu1 %v2947_v22  ;;  %2696 = vmatprep.subr.bf16.mxu0 %v2948_v25  ;;  %v2996_v22 = vld [vmem:[%s3796_s1 + $0x418] sm:$0xff]   ;;  %v2999_v25 = vld [vmem:[%s3796_s1 + $0x4e0] sm:$0xff]  }
  0x66   :  { %2718 = vmatprep.subr.bf16.mxu1 %v2949_v28  ;;  %2143 = vmatprep.mubr.bf16.mxu0 %v317_v8  ;;  %v3002_v28 = vld [vmem:[%s3796_s1 + $0x468] sm:$0xff]   ;;  %v3035_v8 = vld [vmem:[%s3796_s1 + $0x598] sm:$0xff]  }
  0x67   :  { %2183 = vmatprep.mubr.bf16.mxu1 %v319_v9  ;;  %v3036_v9 = vld [vmem:[%s3796_s1 + $0x560] sm:$0xff]  }
  0x68   :  { %2697 = vmatpush3.bf16.msra.mxu0 %v2950_v29  ;;  %v3003_v29 = vld [vmem:[%s3796_s1 + $0x4e8] sm:$0xff]  }
  0x69   :  { %2719 = vmatpush3.bf16.msra.mxu1 %v2951_v30  ;;  %2698 = vmatprep.subr.bf16.mxu0 %v2952_v31  ;;  %v3004_v30 = vld [vmem:[%s3796_s1 + $0x428] sm:$0xff]  }
  0x6a   :  { %2720 = vmatprep.subr.bf16.mxu1 %v2953_v32  ;;  %v3005_v31 = vld [vmem:[%s3796_s1 + $0x4a8] sm:$0xff]   ;;  %v3006_v32 = vld [vmem:[%s3796_s1 + $0x470] sm:$0xff]  }
  0x6c   :  { %2699 = vmatpush3.bf16.msra.mxu0 %v2954_v33  ;;  %v3007_v33 = vld [vmem:[%s3796_s1 + $0x4f0] sm:$0xff]  }
  0x6d   :  { %2721 = vmatpush3.bf16.msra.mxu1 %v2955_v34  ;;  %2700 = vmatprep.subr.bf16.mxu0 %v2956_v35  ;;  %v3008_v34 = vld [vmem:[%s3796_s1 + $0x430] sm:$0xff]  }
  0x6e   :  { %2722 = vmatprep.subr.bf16.mxu1 %v2957_v36  ;;  %v3009_v35 = vld [vmem:[%s3796_s1 + $0x4b0] sm:$0xff]   ;;  %v3010_v36 = vld [vmem:[%s3796_s1 + $0x478] sm:$0xff]  }
  0x70   :  { %2701 = vmatpush3.bf16.msra.mxu0 %v2958_v37  ;;  %v3011_v37 = vld [vmem:[%s3796_s1 + $0x4f8] sm:$0xff]  }
  0x71   :  { %2723 = vmatpush3.bf16.msra.mxu1 %v2959_v38  ;;  %2702 = vmatprep.subr.bf16.mxu0 %v2960_v39  ;;  %v3012_v38 = vld [vmem:[%s3796_s1 + $0x438] sm:$0xff]  }
  0x72   :  { %2724 = vmatprep.subr.bf16.mxu1 %v2961_v40  ;;  %v3013_v39 = vld [vmem:[%s3796_s1 + $0x4b8] sm:$0xff]   ;;  %v3014_v40 = vld [vmem:[%s3795_s0 + $0x20] ss:$48 sps:$4 sm:$0xff]  }
  0x74   :  { %2703 = vmatpush3.bf16.msra.mxu0 %v2962_v41  ;;  %v3016_v41 = vld [vmem:[%s3795_s0 + $0x80] ss:$48 sps:$4 sm:$0xff]  }
  0x75   :  { %2725 = vmatpush3.bf16.msra.mxu1 %v2963_v42  ;;  %2704 = vmatprep.subr.bf16.mxu0 %v2964_v44  ;;  %v3018_v42 = vld [vmem:[%s3795_s0 + $0x24] ss:$48 sps:$4 sm:$0xff]  }
  0x76   :  { %2726 = vmatprep.subr.bf16.mxu1 %v2965_v45  ;;  %v3019_v44 = vld [vmem:[%s3795_s0 + $0x84] ss:$48 sps:$4 sm:$0xff]   ;;  %v218_v45 = vrot.slane %v3014_v40, %v3220_v43 }
  0x78   :  { %2705 = vmatpush3.bf16.msra.mxu0 %v2966_v46  ;;  %v232_v46 = vrot.slane %v3016_v41, %v3220_v43 }
  0x79   :  { %2727 = vmatpush3.bf16.msra.mxu1 %v2967_v47  ;;  %2706 = vmatprep.subr.bf16.mxu0 %v2968_v48  ;;  %v3020_v47 = vld [vmem:[%s3796_s1 + $0x540] sm:$0xff]   ;;  %v225_v48 = vrot.slane %v3018_v42, %v3220_v43 }
  0x7a   :  { %2728 = vmatprep.subr.bf16.mxu1 %v2969_v49  ;;  %v239_v49 = vrot.slane %v3019_v44, %v3220_v43  ;;  %v2369_v44 = vld [vmem:[%s3797_s2] ss:$0 sm:$0xff] }
  0x7c   :  { %2707 = vmatpush3.bf16.msra.mxu0 %v2970_v50  ;;  %v3021_v50 = vld [vmem:[%s3796_s1 + $0x5c0] sm:$0xff]  }
  0x7d   :  { %2729 = vmatpush3.bf16.msra.mxu1 %v2971_v51  ;;  %2708 = vmatprep.subr.bf16.mxu0 %v2972_v52  ;;  %v241_v51 = vcombine.high %v218_v45, %v232_v46  ;;  %v240_v52 = vcombine.low %v218_v45, %v232_v46 }
  0x7e   :  { %2730 = vmatprep.subr.bf16.mxu1 %v2973_v53  ;;  %v3022_v53 = vld [vmem:[%s3796_s1 + $0x500] sm:$0xff]  }
  0x7f   :  { %v321_v57 = vpack.c.bf16 %v241_v51, %v241_v51  ;;  %v320_v58 = vpack.c.bf16 %v240_v52, %v240_v52 }
  0x80   :  { %2709 = vmatpush3.bf16.msra.mxu0 %v2974_v54  ;;  %v243_v54 = vcombine.high %v225_v48, %v239_v49 }
  0x81   :  { %2731 = vmatpush3.bf16.msra.mxu1 %v2975_v55  ;;  %2738 = vmatprep.subr.bf16.mxu0 %v2982_v61  ;;  %v242_v55 = vcombine.low %v225_v48, %v239_v49 }
  0x82   :  { %2760 = vmatprep.subr.bf16.mxu1 %v2983_v1  ;;  %v323_v60 = vpack.c.bf16 %v243_v54, %v243_v54  ;;  %v3028_v1 = vld [vmem:[%s3796_s1 + $0x550] sm:$0xff]  }
  0x83   :  { %2144 = vmatmul.mubr.bf16.vlgmr.msra.gmra.mrb[12].mxu0 %v316_v10  ;;  %v322_v61 = vpack.c.bf16 %v242_v55, %v242_v55  ;;  %v3037_v10 = vld [vmem:[%s3796_s1 + $0x5e0] sm:$0xff]  }
  0x84   :  { %2184 = vmatmul.mubr.bf16.vlgmr.msra.gmra.mrb[12].mxu1 %v318_v11  ;;  %2739 = vmatpush3.bf16.msra.mxu0 %v2984_v6  ;;  %v3033_v6 = vld [vmem:[%s3796_s1 + $0x5d8] sm:$0xff]   ;;  %v3038_v11 = vld [vmem:[%s3796_s1 + $0x520] sm:$0xff]  }
  0x85   :  { %2761 = vmatpush3.bf16.msra.mxu1 %v2985_v7  ;;  %2740 = vmatprep.subr.bf16.mxu0 %v2986_v12  ;;  %v3034_v7 = vld [vmem:[%s3796_s1 + $0x518] sm:$0xff]   ;;  %v3039_v12 = vld [vmem:[%s3796_s1 + $0x5a0] sm:$0xff]  }
  0x86   :  { %2762 = vmatprep.subr.bf16.mxu1 %v2987_v13  ;;  %2223 = vmatprep.mubr.bf16.mxu0 %v321_v57  ;;  %v3040_v13 = vld [vmem:[%s3796_s1 + $0x568] sm:$0xff]  }
  0x87   :  { %2263 = vmatprep.mubr.bf16.mxu1 %v323_v60 }
  0x88   :  { %2741 = vmatpush3.bf16.msra.mxu0 %v2988_v14  ;;  %v3041_v14 = vld [vmem:[%s3796_s1 + $0x5e8] sm:$0xff]  }
  0x89   :  { %2763 = vmatpush3.bf16.msra.mxu1 %v2989_v15  ;;  %2742 = vmatprep.subr.bf16.mxu0 %v2990_v16  ;;  %v3042_v15 = vld [vmem:[%s3796_s1 + $0x528] sm:$0xff]  }
  0x8a   :  { %2764 = vmatprep.subr.bf16.mxu1 %v2991_v17  ;;  %v3043_v16 = vld [vmem:[%s3796_s1 + $0x5a8] sm:$0xff]   ;;  %v3044_v17 = vld [vmem:[%s3796_s1 + $0x570] sm:$0xff]  }
  0x8c   :  { %2743 = vmatpush3.bf16.msra.mxu0 %v2992_v18  ;;  %v3045_v18 = vld [vmem:[%s3796_s1 + $0x5f0] sm:$0xff]  }
  0x8d   :  { %2765 = vmatpush3.bf16.msra.mxu1 %v2993_v19  ;;  %2744 = vmatprep.subr.bf16.mxu0 %v2994_v20  ;;  %v3046_v19 = vld [vmem:[%s3796_s1 + $0x530] sm:$0xff]  }
  0x8e   :  { %2766 = vmatprep.subr.bf16.mxu1 %v2995_v21  ;;  %v3047_v20 = vld [vmem:[%s3796_s1 + $0x5b0] sm:$0xff]   ;;  %v3048_v21 = vld [vmem:[%s3796_s1 + $0x578] sm:$0xff]  }
  0x90   :  { %2745 = vmatpush3.bf16.msra.mxu0 %v2996_v22  ;;  %v3049_v22 = vld [vmem:[%s3796_s1 + $0x5f8] sm:$0xff]  }
  0x91   :  { %2767 = vmatpush3.bf16.msra.mxu1 %v2997_v23  ;;  %2746 = vmatprep.subr.bf16.mxu0 %v2998_v24  ;;  %v3050_v23 = vld [vmem:[%s3796_s1 + $0x538] sm:$0xff]  }
  0x92   :  { %2768 = vmatprep.subr.bf16.mxu1 %v2999_v25  ;;  %v3051_v24 = vld [vmem:[%s3796_s1 + $0x5b8] sm:$0xff]  }
  0x93   :  { %v3052_v25 = vld [vmem:[%s3795_s0 + $0x28] ss:$48 sps:$4 sm:$0xff]  }
  0x94   :  { %2747 = vmatpush3.bf16.msra.mxu0 %v3000_v26  ;;  %v3054_v26 = vld [vmem:[%s3795_s0 + $0x88] ss:$48 sps:$4 sm:$0xff]  }
  0x95   :  { %2769 = vmatpush3.bf16.msra.mxu1 %v3001_v27  ;;  %2748 = vmatprep.subr.bf16.mxu0 %v3002_v28  ;;  %v3056_v27 = vld [vmem:[%s3795_s0 + $0x2c] ss:$48 sps:$4 sm:$0xff]  }
  0x96   :  { %2770 = vmatprep.subr.bf16.mxu1 %v3003_v29  ;;  %v3057_v28 = vld [vmem:[%s3795_s0 + $0x8c] ss:$48 sps:$4 sm:$0xff]   ;;  %v254_v29 = vrot.slane %v3052_v25, %v3220_v43 }
  0x98   :  { %2749 = vmatpush3.bf16.msra.mxu0 %v3004_v30  ;;  %v268_v30 = vrot.slane %v3054_v26, %v3220_v43 }
  0x99   :  { %2771 = vmatpush3.bf16.msra.mxu1 %v3005_v31  ;;  %2750 = vmatprep.subr.bf16.mxu0 %v3006_v32  ;;  %v261_v31 = vrot.slane %v3056_v27, %v3220_v43  ;;  %v275_v32 = vrot.slane %v3057_v28, %v3220_v43 }
  0x9a   :  { %2772 = vmatprep.subr.bf16.mxu1 %v3007_v33  ;;  %v277_v33 = vcombine.high %v254_v29, %v268_v30 }
  0x9c   :  { %2751 = vmatpush3.bf16.msra.mxu0 %v3008_v34  ;;  %v276_v34 = vcombine.low %v254_v29, %v268_v30 }
  0x9d   :  { %2773 = vmatpush3.bf16.msra.mxu1 %v3009_v35  ;;  %2752 = vmatprep.subr.bf16.mxu0 %v3010_v36  ;;  %v279_v35 = vcombine.high %v261_v31, %v275_v32  ;;  %v278_v36 = vcombine.low %v261_v31, %v275_v32 }
  0x9e   :  { %2774 = vmatprep.subr.bf16.mxu1 %v3011_v37  ;;  %v325_v37 = vpack.c.bf16 %v277_v33, %v277_v33 }
  0x9f   :  { %v326_v40 = vpack.c.bf16 %v278_v36, %v278_v36 }
  0xa0   :  { %2753 = vmatpush3.bf16.msra.mxu0 %v3012_v38  ;;  %v324_v38 = vpack.c.bf16 %v276_v34, %v276_v34 }
  0xa1   :  { %2775 = vmatpush3.bf16.msra.mxu1 %v3013_v39  ;;  %2782 = vmatprep.subr.bf16.mxu0 %v3020_v47  ;;  %v327_v39 = vpack.c.bf16 %v279_v35, %v279_v35 }
  0xa2   :  { %2804 = vmatprep.subr.bf16.mxu1 %v3021_v50 }
  0xa3   :  { %2224 = vmatmul.mubr.bf16.vlgmr.msra.gmra.mrb[16].mxu0 %v320_v58 }
  0xa4   :  { %2264 = vmatmul.mubr.bf16.vlgmr.msra.gmra.mrb[16].mxu1 %v322_v61  ;;  %2783 = vmatpush3.bf16.msra.mxu0 %v3022_v53 }
  0xa5   :  { %2805 = vmatpush3.bf16.msra.mxu1 %v3023_v56  ;;  %2784 = vmatprep.subr.bf16.mxu0 %v3024_v59 }
  0xa6   :  { %2806 = vmatprep.subr.bf16.mxu1 %v3025_v62  ;;  %2303 = vmatprep.mubr.bf16.mxu0 %v325_v37 }
  0xa7   :  { %2343 = vmatprep.mubr.bf16.mxu1 %v327_v39 }
  0xa8   :  { %2785 = vmatpush3.bf16.msra.mxu0 %v3026_v63 }
  0xa9   :  { %2807 = vmatpush3.bf16.msra.mxu1 %v3027_v0  ;;  %2786 = vmatprep.subr.bf16.mxu0 %v3028_v1 }
  0xaa   :  { %2808 = vmatprep.subr.bf16.mxu1 %v3029_v2 }
  0xac   :  { %2787 = vmatpush3.bf16.msra.mxu0 %v3030_v3 }
  0xad   :  { %2809 = vmatpush3.bf16.msra.mxu1 %v3031_v4  ;;  %2788 = vmatprep.subr.bf16.mxu0 %v3032_v5 }
  0xae   :  { %2810 = vmatprep.subr.bf16.mxu1 %v3033_v6 }
  0xb0   :  { %2789 = vmatpush3.bf16.msra.mxu0 %v3034_v7 }
  0xb1   :  { %2811 = vmatpush3.bf16.msra.mxu1 %v3035_v8  ;;  %2790 = vmatprep.subr.bf16.mxu0 %v3036_v9 }
  0xb2   :  { %2812 = vmatprep.subr.bf16.mxu1 %v3037_v10 }
  0xb4   :  { %2791 = vmatpush3.bf16.msra.mxu0 %v3038_v11 }
  0xb5   :  { %2813 = vmatpush3.bf16.msra.mxu1 %v3039_v12  ;;  %2792 = vmatprep.subr.bf16.mxu0 %v3040_v13 }
  0xb6   :  { %2814 = vmatprep.subr.bf16.mxu1 %v3041_v14 }
  0xb8   :  { %2793 = vmatpush3.bf16.msra.mxu0 %v3042_v15 }
  0xb9   :  { %2815 = vmatpush3.bf16.msra.mxu1 %v3043_v16  ;;  %2794 = vmatprep.subr.bf16.mxu0 %v3044_v17 }
  0xba   :  { %2816 = vmatprep.subr.bf16.mxu1 %v3045_v18 }
  0xbc   :  { %2795 = vmatpush3.bf16.msra.mxu0 %v3046_v19 }
  0xbd   :  { %2817 = vmatpush3.bf16.msra.mxu1 %v3047_v20  ;;  %2796 = vmatprep.subr.bf16.mxu0 %v3048_v21 }
  0xbe   :  { %2818 = vmatprep.subr.bf16.mxu1 %v3049_v22 }
  0xc0   :  { %2797 = vmatpush3.bf16.msra.mxu0 %v3050_v23 }
  0xc1   :  { %2819 = vmatpush3.bf16.msra.mxu1 %v3051_v24 }
  0xc3   :  { %2304 = vmatmul.mubr.bf16.vlgmr.msra.gmra.mrb[20].mxu0 %v324_v38 }
  0xc4   :  { %2344 = vmatmul.mubr.bf16.vlgmr.msra.gmra.mrb[20].mxu1 %v326_v40 }
  0xf6   :  { %v2578_v41 = vpop.f32.mrb[0].mxu0 }
  0xf7   :  { %v2600_v42 = vpop.f32.mrb[0].mxu1  ;;  %v2579_v43 = vpop.f32.mrb[1].mxu0 }
  0xf8   :  { %v2601_v45 = vpop.f32.mrb[1].mxu1  ;;  %v2580_v46 = vadd.f32 %v2579_v43, %v2578_v41  ;;  %v2581_v48 = vpop.f32.mrb[2].mxu0 }
  0xf9   :  { %v2602_v47 = vadd.f32 %v2601_v45, %v2600_v42  ;;  %v2603_v49 = vpop.f32.mrb[2].mxu1  ;;  %v2582_v50 = vpop.f32.mrb[3].mxu0 }
  0xfa   :  { %v2604_v51 = vpop.f32.mrb[3].mxu1  ;;  %v1906_v52 = vadd.f32 %v2580_v46, %v2369_v44 }
  0xfc   :  { %v1946_v53 = vadd.f32 %v2602_v47, %v1906_v52 }
 0x116   :  { %v2622_v54 = vpop.f32.mrb[4].mxu0 }
 0x117   :  { %v2644_v55 = vpop.f32.mrb[4].mxu1  ;;  %v2623_v56 = vpop.f32.mrb[5].mxu0 }
 0x118   :  { %v2645_v57 = vpop.f32.mrb[5].mxu1  ;;  %v2624_v58 = vadd.f32 %v2623_v56, %v2622_v54  ;;  %v2625_v60 = vpop.f32.mrb[6].mxu0 }
 0x119   :  { %v2646_v59 = vadd.f32 %v2645_v57, %v2644_v55  ;;  %v2647_v61 = vpop.f32.mrb[6].mxu1  ;;  %v2626_v62 = vpop.f32.mrb[7].mxu0 }
 0x11a   :  { %v2648_v63 = vpop.f32.mrb[7].mxu1  ;;  %v1986_v0 = vadd.f32 %v2624_v58, %v1946_v53 }
 0x11c   :  { %v2026_v1 = vadd.f32 %v2646_v59, %v1986_v0 }
 0x136   :  { %v2666_v2 = vpop.f32.mrb[8].mxu0 }
 0x137   :  { %v2688_v3 = vpop.f32.mrb[8].mxu1  ;;  %v2667_v4 = vpop.f32.mrb[9].mxu0 }
 0x138   :  { %v2668_v5 = vadd.f32 %v2667_v4, %v2666_v2  ;;  %v2689_v6 = vpop.f32.mrb[9].mxu1  ;;  %v2669_v7 = vpop.f32.mrb[10].mxu0 }
 0x139   :  { %v2690_v8 = vadd.f32 %v2689_v6, %v2688_v3  ;;  %v2691_v9 = vpop.f32.mrb[10].mxu1  ;;  %v2670_v10 = vpop.f32.mrb[11].mxu0 }
 0x13a   :  { %v2066_v11 = vadd.f32 %v2668_v5, %v2026_v1  ;;  %v2692_v12 = vpop.f32.mrb[11].mxu1 }
 0x13c   :  { %v2106_v13 = vadd.f32 %v2690_v8, %v2066_v11 }
 0x156   :  { %v2710_v14 = vpop.f32.mrb[12].mxu0 }
 0x157   :  { %v2732_v15 = vpop.f32.mrb[12].mxu1  ;;  %v2711_v16 = vpop.f32.mrb[13].mxu0 }
 0x158   :  { %v2733_v17 = vpop.f32.mrb[13].mxu1  ;;  %v2712_v18 = vadd.f32 %v2711_v16, %v2710_v14  ;;  %v2713_v20 = vpop.f32.mrb[14].mxu0 }
 0x159   :  { %v2734_v19 = vadd.f32 %v2733_v17, %v2732_v15  ;;  %v2735_v21 = vpop.f32.mrb[14].mxu1  ;;  %v2714_v22 = vpop.f32.mrb[15].mxu0 }
 0x15a   :  { %v2736_v23 = vpop.f32.mrb[15].mxu1  ;;  %v2146_v24 = vadd.f32 %v2712_v18, %v2106_v13 }
 0x15c   :  { %v2186_v25 = vadd.f32 %v2734_v19, %v2146_v24 }
 0x176   :  { %v2754_v26 = vpop.f32.mrb[16].mxu0 }
 0x177   :  { %v2776_v27 = vpop.f32.mrb[16].mxu1  ;;  %v2755_v28 = vpop.f32.mrb[17].mxu0 }
 0x178   :  { %v2756_v29 = vadd.f32 %v2755_v28, %v2754_v26  ;;  %v2777_v30 = vpop.f32.mrb[17].mxu1  ;;  %v2757_v31 = vpop.f32.mrb[18].mxu0 }
 0x179   :  { %v2778_v32 = vadd.f32 %v2777_v30, %v2776_v27  ;;  %v2779_v33 = vpop.f32.mrb[18].mxu1  ;;  %v2758_v34 = vpop.f32.mrb[19].mxu0 }
 0x17a   :  { %v2226_v35 = vadd.f32 %v2756_v29, %v2186_v25  ;;  %v2780_v36 = vpop.f32.mrb[19].mxu1 }
 0x17c   :  { %v2266_v37 = vadd.f32 %v2778_v32, %v2226_v35 }
 0x196   :  { %v2798_v38 = vpop.f32.mrb[20].mxu0 }
 0x197   :  { %v2820_v39 = vpop.f32.mrb[20].mxu1  ;;  %v2799_v40 = vpop.f32.mrb[21].mxu0 }
 0x198   :  { %v2800_v41 = vadd.f32 %v2799_v40, %v2798_v38  ;;  %v2821_v42 = vpop.f32.mrb[21].mxu1  ;;  %v2801_v44 = vpop.f32.mrb[22].mxu0 }
 0x199   :  { %v2822_v43 = vadd.f32 %v2821_v42, %v2820_v39  ;;  %v2823_v45 = vpop.f32.mrb[22].mxu1  ;;  %v2802_v46 = vpop.f32.mrb[23].mxu0 }
 0x19a   :  { %v2306_v47 = vadd.f32 %v2800_v41, %v2266_v37  ;;  %v2824_v48 = vpop.f32.mrb[23].mxu1 }
 0x19c   :  { %v2346_v49 = vadd.f32 %v2822_v43, %v2306_v47 }
 0x19e   :  { %2352 = vst.msk [vmem:[#allocation2] sm:$0xff] %vm2351_vm0, %v2346_v49 }
 0x19f   :  { %2357 = vsyncadd [#allocation3], 96  ;;  %s3083_s2 = smov [#allocation2]  }
 0x1a0   :  { %s2358_s12 = sshll.u32 %s3083_s2, 4  ;;  %s2359_s12 = int_to_ptr.vmem [resolvable:$true] %s2358_s12 }
 0x1a1   :  { %s3058_s13 = scalar_lea.vmem %s2359_s12, 32  ;;  %s3062_s14 = scalar_lea.vmem %s2359_s12, 128 }
 0x1a2   :  { %p3059_p0 = scmp.ne.s32.totalorder %s2359_s12, %s3058_s13  ;;  %p3063_p1 = scmp.lt.s32.totalorder %s2359_s12, %s2359_s12 }
 0x1a3   :  { %p3064_p2 = scmp.lt.s32.totalorder %s3062_s14, %s3058_s13 }
 0x1a5   :  { %p3065_p3 = por %p3064_p2, %p3063_p1 }
 0x1a7   :  { %p3066_p4 = pnand %p3065_p3, %p3059_p0 }
 0x1a9   :  { %3069 = shalt.err (!%p3066_p4)
}
 0x1aa   :  { %s3070_s17 = scalar_lea.hbm %s3798_s3, 32 }
 0x1ab   :  { %p3071_p5 = scmp.ne.s32.totalorder %s3798_s3, %s3070_s17  ;;  %p3074_p6 = scmp.lt.u32.totalorder %s3070_s17, %s3798_s3 }
 0x1ad   :  { %p3076_p7 = pnand %p3074_p6, %p3071_p5 }
 0x1af   :  { %3079 = shalt.err (!%p3076_p7)
}
 0x1b0   :  { %s3084_s22 = smov 32   ;;  %s3085_s23 = smov 2  }
 0x1b1   :  { %2364 = dma.vmem_to_hbm [thread:$0]  %s2359_s12, 32, %s3798_s3, [#allocation3], %s3084_s22, %s3084_s22, %s3085_s23  }
 0x1b2   :  { %3080 = dma.done.wait [#allocation3], 128  }
 0x1b3   :  { %3081 = vsyncadd [#allocation3], 4294967168 }
 0x1b4   :  { %2368 = vsyncpa [#allocation3], 1 }

</bundles_post_ra>
